<compile_context>
chip_gen: v5e
topology: v5e:2x2
jax: 0.10.0
libtpu: 0.0.40
codegen_flags: <defaults>
</compile_context>

<pallas_src>
import jax
import jax.numpy as jnp
from jax.experimental import pallas as pl
from jax.experimental.pallas import tpu as pltpu

EPS = 1e-5

# Every grid step handles an independent batch sample -> megacore-parallel.
_PARALLEL = pltpu.CompilerParams(dimension_semantics=("parallel",))


def _im2col_k3(x2d):
    """(C, L) -> (3C, L) im2col for a kernel-3, pad-1, stride-1 conv.

    Row block k (k = 0, 1, 2) holds x shifted so column l equals x[:, l + k - 1],
    with the conv's zero padding built in at the sequence boundary.  This feeds a
    single MXU matmul with K = 3C instead of three per-tap matmuls and never
    materializes an (L+2)-padded copy of the input.
    """
    c, l = x2d.shape
    zcol = jnp.zeros((c, 1), x2d.dtype)
    left = jnp.concatenate([zcol, x2d[:, : l - 1]], axis=1)   # column l -> x[:, l-1]
    right = jnp.concatenate([x2d[:, 1:], zcol], axis=1)       # column l -> x[:, l+1]
    return jnp.concatenate([left, x2d, right], axis=0)        # (3C, L)


def _conv_stats_kernel(x_ref, w_ref, y_ref, s_ref, q_ref):
    """Pass 1: conv1 as one im2col matmul + fused per-sample BN1 statistics."""
    # x_ref: (1, Cin, L)   w_ref: (Cout, 3*Cin)
    # y_ref: (1, Cout, L)  s_ref/q_ref: (1, Cout, 1) per-sample partial stats.
    x = x_ref[0].astype(jnp.float32)
    patches = _im2col_k3(x).astype(w_ref.dtype)
    y = jnp.dot(w_ref[...], patches, preferred_element_type=jnp.float32)  # (Cout, L)
    y_ref[0] = y
    # BN statistics fused into the conv epilogue (lane-axis reductions -> XLU).
    s_ref[0] = jnp.sum(y, axis=1, keepdims=True)
    q_ref[0] = jnp.sum(y * y, axis=1, keepdims=True)


def _bn_relu_conv_stats_kernel(y1_ref, scale_ref, shift_ref, w_ref,
                               y2_ref, s_ref, q_ref):
    """Pass 2: BN1 (folded per-channel scale/shift FMA) + ReLU + conv2 + BN2 stats."""
    h = jnp.maximum(y1_ref[0] * scale_ref[...] + shift_ref[...], 0.0)     # (Cout, L)
    patches = _im2col_k3(h).astype(w_ref.dtype)
    y = jnp.dot(w_ref[...], patches, preferred_element_type=jnp.float32)
    y2_ref[0] = y
    s_ref[0] = jnp.sum(y, axis=1, keepdims=True)
    q_ref[0] = jnp.sum(y * y, axis=1, keepdims=True)


def _bn_residual_relu_kernel(y2_ref, x_ref, scale_ref, shift_ref, o_ref):
    """Pass 3: BN2 (folded FMA) + identity residual + ReLU."""
    out = y2_ref[0] * scale_ref[...] + shift_ref[...] + x_ref[0].astype(jnp.float32)
    o_ref[0] = jnp.maximum(out, 0.0).astype(o_ref.dtype)


def _fold_bn(sum_p, sumsq_p, gamma, beta, count):
    """Fold training-mode BN into per-channel (scale, shift): one rsqrt/channel.

    Runs as tiny C-sized XLA math between passes (var = E[y^2] - E[y]^2 in f32).
    """
    s = jnp.sum(sum_p, axis=0)                    # (Cout, 1)
    q = jnp.sum(sumsq_p, axis=0)                  # (Cout, 1)
    mean = s / count
    var = q / count - mean * mean                 # biased variance
    inv = jax.lax.rsqrt(var + EPS)
    scale = gamma[:, None] * inv
    shift = beta[:, None] - mean * scale
    return scale, shift


@jax.jit
def basic_block_forward(x_ncl, params):
    """x_ncl: (N, C, L) float32 (PyTorch Conv1d layout).  Returns (N, C, L)."""
    w1, g1, b1, w2, g2, b2 = params               # conv weights in torch (Cout, Cin, 3)
    n, c, l = x_ncl.shape
    cout, cin, kw = w1.shape
    assert kw == 3 and cin == c
    assert cout == c, "identity residual requires out_channel == in_channel"
    # TODO(synk): downsample / stride != 1 path not implemented (module default None).

    # (Cout, Cin, 3) -> (Cout, 3*Cin), column index = tap*Cin + ci, matching the
    # im2col row layout.  bf16 matmul operands (f32 accumulate) only when the
    # contraction is wide enough to pay off on the v6e/v7x MXU.
    mm_dtype = jnp.bfloat16 if cin >= 64 else jnp.float32
    w1_flat = jnp.transpose(w1, (0, 2, 1)).reshape(cout, 3 * cin).astype(mm_dtype)
    w2_flat = jnp.transpose(w2, (0, 2, 1)).reshape(cout, 3 * cout).astype(mm_dtype)

    row = lambda i: (i, 0, 0)                     # one sample per grid step
    fix2 = lambda i: (0, 0)                       # weights / BN coeffs: fetched once
    x_spec = pl.BlockSpec((1, c, l), row)
    act_spec = pl.BlockSpec((1, cout, l), row)
    stat_spec = pl.BlockSpec((1, cout, 1), row)
    col_spec = pl.BlockSpec((cout, 1), fix2)
    stat_shape = jax.ShapeDtypeStruct((n, cout, 1), jnp.float32)
    act_shape = jax.ShapeDtypeStruct((n, cout, l), jnp.float32)

    # ---- Pass 1: conv1 + fused BN1 statistics -------------------------------
    y1, s1, q1 = pl.pallas_call(
        _conv_stats_kernel,
        grid=(n,),
        in_specs=[x_spec, pl.BlockSpec((cout, 3 * cin), fix2)],
        out_specs=(act_spec, stat_spec, stat_spec),
        out_shape=(act_shape, stat_shape, stat_shape),
        compiler_params=_PARALLEL,
    )(x_ncl, w1_flat)
    scale1, shift1 = _fold_bn(s1, q1, g1, b1, float(n * l))

    # ---- Pass 2: BN1 + ReLU + conv2 + fused BN2 statistics ------------------
    y2, s2, q2 = pl.pallas_call(
        _bn_relu_conv_stats_kernel,
        grid=(n,),
        in_specs=[act_spec, col_spec, col_spec,
                  pl.BlockSpec((cout, 3 * cout), fix2)],
        out_specs=(act_spec, stat_spec, stat_spec),
        out_shape=(act_shape, stat_shape, stat_shape),
        compiler_params=_PARALLEL,
    )(y1, scale1, shift1, w2_flat)
    scale2, shift2 = _fold_bn(s2, q2, g2, b2, float(n * l))

    # ---- Pass 3: BN2 + residual + ReLU --------------------------------------
    out = pl.pallas_call(
        _bn_residual_relu_kernel,
        grid=(n,),
        in_specs=[act_spec, x_spec, col_spec, col_spec],
        out_specs=x_spec,
        out_shape=jax.ShapeDtypeStruct((n, c, l), x_ncl.dtype),
        compiler_params=_PARALLEL,
    )(y2, x_ncl, scale2, shift2)
    return out


def init_params(key, in_channel, out_channel):
    """Synthetic parameters in PyTorch layouts: conv (Cout, Cin, 3); BN gamma=1, beta=0."""
    k1, k2 = jax.random.split(key)
    w1 = jax.random.normal(k1, (out_channel, in_channel, 3), jnp.float32) * 0.1
    w2 = jax.random.normal(k2, (out_channel, out_channel, 3), jnp.float32) * 0.1
    g1 = jnp.ones((out_channel,), jnp.float32)
    b1 = jnp.zeros((out_channel,), jnp.float32)
    g2 = jnp.ones((out_channel,), jnp.float32)
    b2 = jnp.zeros((out_channel,), jnp.float32)
    return (w1, g1, b1, w2, g2, b2)


def _reference_forward(x, params):
    """Pure-JAX reference (lax.conv + batch-stat BN) used as a correctness check."""
    w1, g1, b1, w2, g2, b2 = params

    def conv(h, w):
        return jax.lax.conv_general_dilated(
            h, w, window_strides=(1,), padding=((1, 1),),
            dimension_numbers=("NCH", "OIH", "NCH"),
            precision=jax.lax.Precision.HIGHEST)

    def bn(h, g, b):
        mean = jnp.mean(h, axis=(0, 2), keepdims=True)
        var = jnp.mean((h - mean) ** 2, axis=(0, 2), keepdims=True)
        hhat = (h - mean) * jax.lax.rsqrt(var + EPS)
        return hhat * g.reshape(1, -1, 1) + b.reshape(1, -1, 1)

    h = jnp.maximum(bn(conv(x, w1), g1, b1), 0.0)
    h = bn(conv(h, w2), g2, b2)
    return jnp.maximum(h + x, 0.0)


if __name__ == "__main__":
    key = jax.random.PRNGKey(0)
    kx, kp = jax.random.split(key)

    N, C, L = 2, 4, 16                            # small (N, C, L) demo input
    x = jax.random.normal(kx, (N, C, L), jnp.float32)
    params = init_params(kp, in_channel=C, out_channel=C)

    y = jax.block_until_ready(basic_block_forward(x, params))
    assert y.shape == (N, C, L)

    # Correctness check against the pure-JAX reference (loose tol covers any
    # MXU operand-precision differences between the two conv implementations).
    ref = _reference_forward(x, params)
    assert jnp.allclose(y, ref, atol=2e-2, rtol=2e-2), "mismatch vs pure-JAX reference"
    print("KERNEL_OK")
</pallas_src>

<mosaic_0001>
module attributes {stable_mosaic.version = 11 : i64} {
  func.func @_conv_stats_kernel(%arg0: i32, %arg1: memref<1x4x16xf32, #tpu.memory_space<vmem>>, %arg2: memref<4x12xf32, #tpu.memory_space<vmem>>, %arg3: memref<1x4x16xf32, #tpu.memory_space<vmem>>, %arg4: memref<1x4x1xf32, #tpu.memory_space<vmem>>, %arg5: memref<1x4x1xf32, #tpu.memory_space<vmem>>) attributes {dimension_semantics = [#tpu.dimension_semantics<parallel>], iteration_bounds = array<i64: 2>, scalar_prefetch = 0 : i64, scratch_operands = 0 : i64, tpu.core_type = #tpu.core_type<tc>, window_params = [{transform_indices = @transform_0, window_bounds = array<i64: 1, 4, 16>}, {pipeline_mode = #tpu.pipeline_mode<synchronous>, transform_indices = @transform_1, window_bounds = array<i64: 4, 12>}, {transform_indices = @transform_2, window_bounds = array<i64: 1, 4, 16>}, {transform_indices = @transform_3, window_bounds = array<i64: 1, 4, 1>}, {transform_indices = @transform_4, window_bounds = array<i64: 1, 4, 1>}]} {
    %c0 = arith.constant 0 : index
    %c0_0 = arith.constant 0 : index
    %c0_1 = arith.constant 0 : index
    %0 = vector.load %arg1[%c0, %c0_0, %c0_1] : memref<1x4x16xf32, #tpu.memory_space<vmem>>, vector<1x4x16xf32>
    %1 = vector.shape_cast %0 : vector<1x4x16xf32> to vector<4x16xf32>
    %cst = arith.constant 0.000000e+00 : f32
    %2 = vector.broadcast %cst : f32 to vector<4x1xf32>
    %3 = vector.extract_strided_slice %1 {offsets = [0, 0], sizes = [4, 15], strides = [1, 1]} : vector<4x16xf32> to vector<4x15xf32>
    %4 = tpu.concatenate %2, %3 in 1 : vector<4x1xf32>, vector<4x15xf32> -> vector<4x16xf32>
    %5 = vector.extract_strided_slice %1 {offsets = [0, 1], sizes = [4, 15], strides = [1, 1]} : vector<4x16xf32> to vector<4x15xf32>
    %6 = tpu.concatenate %5, %2 in 1 : vector<4x15xf32>, vector<4x1xf32> -> vector<4x16xf32>
    %7 = tpu.concatenate %4, %1, %6 in 0 : vector<4x16xf32>, vector<4x16xf32>, vector<4x16xf32> -> vector<12x16xf32>
    %c0_2 = arith.constant 0 : index
    %c0_3 = arith.constant 0 : index
    %8 = vector.load %arg2[%c0_2, %c0_3] : memref<4x12xf32, #tpu.memory_space<vmem>>, vector<4x12xf32>
    %cst_4 = arith.constant dense<0.000000e+00> : vector<4x16xf32>
    %9 = tpu.matmul %8, %7, %cst_4 {dimension_numbers = #tpu.dot_dimension_numbers<[1], [0], [0], [1], [0, 0, 1, 1], [], []>} : vector<4x12xf32>, vector<12x16xf32>, vector<4x16xf32> -> vector<4x16xf32>
    %c0_5 = arith.constant 0 : index
    %c0_6 = arith.constant 0 : index
    %c0_7 = arith.constant 0 : index
    %10 = vector.load %arg3[%c0_5, %c0_6, %c0_7] : memref<1x4x16xf32, #tpu.memory_space<vmem>>, vector<1x4x16xf32>
    %11 = vector.shape_cast %10 : vector<1x4x16xf32> to vector<4x16xf32>
    %12 = vector.shape_cast %9 : vector<4x16xf32> to vector<1x4x16xf32>
    tpu.vector_store %arg3[%c0_5, %c0_6, %c0_7], %12 {strides = array<i32>} : memref<1x4x16xf32, #tpu.memory_space<vmem>>, vector<1x4x16xf32>,
    %cst_8 = arith.constant dense<0.000000e+00> : vector<4xf32>
    %13 = vector.multi_reduction <add>, %9, %cst_8 [1] : vector<4x16xf32> to vector<4xf32>
    %14 = vector.shape_cast %13 : vector<4xf32> to vector<4x1xf32>
    %c0_9 = arith.constant 0 : index
    %c0_10 = arith.constant 0 : index
    %c0_11 = arith.constant 0 : index
    %15 = vector.load %arg4[%c0_9, %c0_10, %c0_11] : memref<1x4x1xf32, #tpu.memory_space<vmem>>, vector<1x4x1xf32>
    %16 = vector.shape_cast %15 : vector<1x4x1xf32> to vector<4x1xf32>
    %17 = vector.shape_cast %14 : vector<4x1xf32> to vector<1x4x1xf32>
    tpu.vector_store %arg4[%c0_9, %c0_10, %c0_11], %17 {strides = array<i32>} : memref<1x4x1xf32, #tpu.memory_space<vmem>>, vector<1x4x1xf32>,
    %18 = arith.mulf %9, %9 : vector<4x16xf32>
    %cst_12 = arith.constant dense<0.000000e+00> : vector<4xf32>
    %19 = vector.multi_reduction <add>, %18, %cst_12 [1] : vector<4x16xf32> to vector<4xf32>
    %20 = vector.shape_cast %19 : vector<4xf32> to vector<4x1xf32>
    %c0_13 = arith.constant 0 : index
    %c0_14 = arith.constant 0 : index
    %c0_15 = arith.constant 0 : index
    %21 = vector.load %arg5[%c0_13, %c0_14, %c0_15] : memref<1x4x1xf32, #tpu.memory_space<vmem>>, vector<1x4x1xf32>
    %22 = vector.shape_cast %21 : vector<1x4x1xf32> to vector<4x1xf32>
    %23 = vector.shape_cast %20 : vector<4x1xf32> to vector<1x4x1xf32>
    tpu.vector_store %arg5[%c0_13, %c0_14, %c0_15], %23 {strides = array<i32>} : memref<1x4x1xf32, #tpu.memory_space<vmem>>, vector<1x4x1xf32>,
    return
  }
  func.func @transform_0(%arg0: i32) -> (i32, i32, i32) {
    %c0_i32 = arith.constant 0 : i32
    %c0_i32_0 = arith.constant 0 : i32
    %c0_i32_1 = arith.constant 0 : i32
    return %arg0, %c0_i32, %c0_i32_0 : i32, i32, i32
  }
  func.func @transform_1(%arg0: i32) -> (i32, i32) {
    %c0_i32 = arith.constant 0 : i32
    %c0_i32_0 = arith.constant 0 : i32
    %c0_i32_1 = arith.constant 0 : i32
    return %c0_i32, %c0_i32_0 : i32, i32
  }
  func.func @transform_2(%arg0: i32) -> (i32, i32, i32) {
    %c0_i32 = arith.constant 0 : i32
    %c0_i32_0 = arith.constant 0 : i32
    %c0_i32_1 = arith.constant 0 : i32
    return %arg0, %c0_i32, %c0_i32_0 : i32, i32, i32
  }
  func.func @transform_3(%arg0: i32) -> (i32, i32, i32) {
    %c0_i32 = arith.constant 0 : i32
    %c0_i32_0 = arith.constant 0 : i32
    %c0_i32_1 = arith.constant 0 : i32
    return %arg0, %c0_i32, %c0_i32_0 : i32, i32, i32
  }
  func.func @transform_4(%arg0: i32) -> (i32, i32, i32) {
    %c0_i32 = arith.constant 0 : i32
    %c0_i32_0 = arith.constant 0 : i32
    %c0_i32_1 = arith.constant 0 : i32
    return %arg0, %c0_i32, %c0_i32_0 : i32, i32, i32
  }
}

module attributes {stable_mosaic.version = 11 : i64} {
  func.func @_bn_residual_relu_kernel(%arg0: i32, %arg1: memref<1x4x16xf32, #tpu.memory_space<vmem>>, %arg2: memref<1x4x16xf32, #tpu.memory_space<vmem>>, %arg3: memref<4x1xf32, #tpu.memory_space<vmem>>, %arg4: memref<4x1xf32, #tpu.memory_space<vmem>>, %arg5: memref<1x4x16xf32, #tpu.memory_space<vmem>>) attributes {dimension_semantics = [#tpu.dimension_semantics<parallel>], iteration_bounds = array<i64: 2>, scalar_prefetch = 0 : i64, scratch_operands = 0 : i64, tpu.core_type = #tpu.core_type<tc>, window_params = [{transform_indices = @transform_0, window_bounds = array<i64: 1, 4, 16>}, {transform_indices = @transform_1, window_bounds = array<i64: 1, 4, 16>}, {pipeline_mode = #tpu.pipeline_mode<synchronous>, transform_indices = @transform_2, window_bounds = array<i64: 4, 1>}, {pipeline_mode = #tpu.pipeline_mode<synchronous>, transform_indices = @transform_3, window_bounds = array<i64: 4, 1>}, {transform_indices = @transform_4, window_bounds = array<i64: 1, 4, 16>}]} {
    %c0 = arith.constant 0 : index
    %c0_0 = arith.constant 0 : index
    %c0_1 = arith.constant 0 : index
    %0 = vector.load %arg1[%c0, %c0_0, %c0_1] : memref<1x4x16xf32, #tpu.memory_space<vmem>>, vector<1x4x16xf32>
    %1 = vector.shape_cast %0 : vector<1x4x16xf32> to vector<4x16xf32>
    %c0_2 = arith.constant 0 : index
    %c0_3 = arith.constant 0 : index
    %2 = vector.load %arg3[%c0_2, %c0_3] : memref<4x1xf32, #tpu.memory_space<vmem>>, vector<4x1xf32>
    %3 = vector.broadcast %2 : vector<4x1xf32> to vector<4x16xf32>
    %4 = arith.mulf %1, %3 : vector<4x16xf32>
    %c0_4 = arith.constant 0 : index
    %c0_5 = arith.constant 0 : index
    %5 = vector.load %arg4[%c0_4, %c0_5] : memref<4x1xf32, #tpu.memory_space<vmem>>, vector<4x1xf32>
    %6 = vector.broadcast %5 : vector<4x1xf32> to vector<4x16xf32>
    %7 = arith.addf %4, %6 : vector<4x16xf32>
    %c0_6 = arith.constant 0 : index
    %c0_7 = arith.constant 0 : index
    %c0_8 = arith.constant 0 : index
    %8 = vector.load %arg2[%c0_6, %c0_7, %c0_8] : memref<1x4x16xf32, #tpu.memory_space<vmem>>, vector<1x4x16xf32>
    %9 = vector.shape_cast %8 : vector<1x4x16xf32> to vector<4x16xf32>
    %10 = arith.addf %7, %9 : vector<4x16xf32>
    %cst = arith.constant 0.000000e+00 : f32
    %11 = vector.broadcast %cst : f32 to vector<4x16xf32>
    %12 = arith.maximumf %10, %11 : vector<4x16xf32>
    %c0_9 = arith.constant 0 : index
    %c0_10 = arith.constant 0 : index
    %c0_11 = arith.constant 0 : index
    %13 = vector.load %arg5[%c0_9, %c0_10, %c0_11] : memref<1x4x16xf32, #tpu.memory_space<vmem>>, vector<1x4x16xf32>
    %14 = vector.shape_cast %13 : vector<1x4x16xf32> to vector<4x16xf32>
    %15 = vector.shape_cast %12 : vector<4x16xf32> to vector<1x4x16xf32>
    tpu.vector_store %arg5[%c0_9, %c0_10, %c0_11], %15 {strides = array<i32>} : memref<1x4x16xf32, #tpu.memory_space<vmem>>, vector<1x4x16xf32>,
    return
  }
  func.func @transform_0(%arg0: i32) -> (i32, i32, i32) {
    %c0_i32 = arith.constant 0 : i32
    %c0_i32_0 = arith.constant 0 : i32
    %c0_i32_1 = arith.constant 0 : i32
    return %arg0, %c0_i32, %c0_i32_0 : i32, i32, i32
  }
  func.func @transform_1(%arg0: i32) -> (i32, i32, i32) {
    %c0_i32 = arith.constant 0 : i32
    %c0_i32_0 = arith.constant 0 : i32
    %c0_i32_1 = arith.constant 0 : i32
    return %arg0, %c0_i32, %c0_i32_0 : i32, i32, i32
  }
  func.func @transform_2(%arg0: i32) -> (i32, i32) {
    %c0_i32 = arith.constant 0 : i32
    %c0_i32_0 = arith.constant 0 : i32
    %c0_i32_1 = arith.constant 0 : i32
    return %c0_i32, %c0_i32_0 : i32, i32
  }
  func.func @transform_3(%arg0: i32) -> (i32, i32) {
    %c0_i32 = arith.constant 0 : i32
    %c0_i32_0 = arith.constant 0 : i32
    %c0_i32_1 = arith.constant 0 : i32
    return %c0_i32, %c0_i32_0 : i32, i32
  }
  func.func @transform_4(%arg0: i32) -> (i32, i32, i32) {
    %c0_i32 = arith.constant 0 : i32
    %c0_i32_0 = arith.constant 0 : i32
    %c0_i32_1 = arith.constant 0 : i32
    return %arg0, %c0_i32, %c0_i32_0 : i32, i32, i32
  }
}

module attributes {stable_mosaic.version = 11 : i64} {
  func.func @_bn_relu_conv_stats_kernel(%arg0: i32, %arg1: memref<1x4x16xf32, #tpu.memory_space<vmem>>, %arg2: memref<4x1xf32, #tpu.memory_space<vmem>>, %arg3: memref<4x1xf32, #tpu.memory_space<vmem>>, %arg4: memref<4x12xf32, #tpu.memory_space<vmem>>, %arg5: memref<1x4x16xf32, #tpu.memory_space<vmem>>, %arg6: memref<1x4x1xf32, #tpu.memory_space<vmem>>, %arg7: memref<1x4x1xf32, #tpu.memory_space<vmem>>) attributes {dimension_semantics = [#tpu.dimension_semantics<parallel>], iteration_bounds = array<i64: 2>, scalar_prefetch = 0 : i64, scratch_operands = 0 : i64, tpu.core_type = #tpu.core_type<tc>, window_params = [{transform_indices = @transform_0, window_bounds = array<i64: 1, 4, 16>}, {pipeline_mode = #tpu.pipeline_mode<synchronous>, transform_indices = @transform_1, window_bounds = array<i64: 4, 1>}, {pipeline_mode = #tpu.pipeline_mode<synchronous>, transform_indices = @transform_2, window_bounds = array<i64: 4, 1>}, {pipeline_mode = #tpu.pipeline_mode<synchronous>, transform_indices = @transform_3, window_bounds = array<i64: 4, 12>}, {transform_indices = @transform_4, window_bounds = array<i64: 1, 4, 16>}, {transform_indices = @transform_5, window_bounds = array<i64: 1, 4, 1>}, {transform_indices = @transform_6, window_bounds = array<i64: 1, 4, 1>}]} {
    %c0 = arith.constant 0 : index
    %c0_0 = arith.constant 0 : index
    %c0_1 = arith.constant 0 : index
    %0 = vector.load %arg1[%c0, %c0_0, %c0_1] : memref<1x4x16xf32, #tpu.memory_space<vmem>>, vector<1x4x16xf32>
    %1 = vector.shape_cast %0 : vector<1x4x16xf32> to vector<4x16xf32>
    %c0_2 = arith.constant 0 : index
    %c0_3 = arith.constant 0 : index
    %2 = vector.load %arg2[%c0_2, %c0_3] : memref<4x1xf32, #tpu.memory_space<vmem>>, vector<4x1xf32>
    %3 = vector.broadcast %2 : vector<4x1xf32> to vector<4x16xf32>
    %4 = arith.mulf %1, %3 : vector<4x16xf32>
    %c0_4 = arith.constant 0 : index
    %c0_5 = arith.constant 0 : index
    %5 = vector.load %arg3[%c0_4, %c0_5] : memref<4x1xf32, #tpu.memory_space<vmem>>, vector<4x1xf32>
    %6 = vector.broadcast %5 : vector<4x1xf32> to vector<4x16xf32>
    %7 = arith.addf %4, %6 : vector<4x16xf32>
    %cst = arith.constant 0.000000e+00 : f32
    %8 = vector.broadcast %cst : f32 to vector<4x16xf32>
    %9 = arith.maximumf %7, %8 : vector<4x16xf32>
    %cst_6 = arith.constant 0.000000e+00 : f32
    %10 = vector.broadcast %cst_6 : f32 to vector<4x1xf32>
    %11 = vector.extract_strided_slice %9 {offsets = [0, 0], sizes = [4, 15], strides = [1, 1]} : vector<4x16xf32> to vector<4x15xf32>
    %12 = tpu.concatenate %10, %11 in 1 : vector<4x1xf32>, vector<4x15xf32> -> vector<4x16xf32>
    %13 = vector.extract_strided_slice %9 {offsets = [0, 1], sizes = [4, 15], strides = [1, 1]} : vector<4x16xf32> to vector<4x15xf32>
    %14 = tpu.concatenate %13, %10 in 1 : vector<4x15xf32>, vector<4x1xf32> -> vector<4x16xf32>
    %15 = tpu.concatenate %12, %9, %14 in 0 : vector<4x16xf32>, vector<4x16xf32>, vector<4x16xf32> -> vector<12x16xf32>
    %c0_7 = arith.constant 0 : index
    %c0_8 = arith.constant 0 : index
    %16 = vector.load %arg4[%c0_7, %c0_8] : memref<4x12xf32, #tpu.memory_space<vmem>>, vector<4x12xf32>
    %cst_9 = arith.constant dense<0.000000e+00> : vector<4x16xf32>
    %17 = tpu.matmul %16, %15, %cst_9 {dimension_numbers = #tpu.dot_dimension_numbers<[1], [0], [0], [1], [0, 0, 1, 1], [], []>} : vector<4x12xf32>, vector<12x16xf32>, vector<4x16xf32> -> vector<4x16xf32>
    %c0_10 = arith.constant 0 : index
    %c0_11 = arith.constant 0 : index
    %c0_12 = arith.constant 0 : index
    %18 = vector.load %arg5[%c0_10, %c0_11, %c0_12] : memref<1x4x16xf32, #tpu.memory_space<vmem>>, vector<1x4x16xf32>
    %19 = vector.shape_cast %18 : vector<1x4x16xf32> to vector<4x16xf32>
    %20 = vector.shape_cast %17 : vector<4x16xf32> to vector<1x4x16xf32>
    tpu.vector_store %arg5[%c0_10, %c0_11, %c0_12], %20 {strides = array<i32>} : memref<1x4x16xf32, #tpu.memory_space<vmem>>, vector<1x4x16xf32>,
    %cst_13 = arith.constant dense<0.000000e+00> : vector<4xf32>
    %21 = vector.multi_reduction <add>, %17, %cst_13 [1] : vector<4x16xf32> to vector<4xf32>
    %22 = vector.shape_cast %21 : vector<4xf32> to vector<4x1xf32>
    %c0_14 = arith.constant 0 : index
    %c0_15 = arith.constant 0 : index
    %c0_16 = arith.constant 0 : index
    %23 = vector.load %arg6[%c0_14, %c0_15, %c0_16] : memref<1x4x1xf32, #tpu.memory_space<vmem>>, vector<1x4x1xf32>
    %24 = vector.shape_cast %23 : vector<1x4x1xf32> to vector<4x1xf32>
    %25 = vector.shape_cast %22 : vector<4x1xf32> to vector<1x4x1xf32>
    tpu.vector_store %arg6[%c0_14, %c0_15, %c0_16], %25 {strides = array<i32>} : memref<1x4x1xf32, #tpu.memory_space<vmem>>, vector<1x4x1xf32>,
    %26 = arith.mulf %17, %17 : vector<4x16xf32>
    %cst_17 = arith.constant dense<0.000000e+00> : vector<4xf32>
    %27 = vector.multi_reduction <add>, %26, %cst_17 [1] : vector<4x16xf32> to vector<4xf32>
    %28 = vector.shape_cast %27 : vector<4xf32> to vector<4x1xf32>
    %c0_18 = arith.constant 0 : index
    %c0_19 = arith.constant 0 : index
    %c0_20 = arith.constant 0 : index
    %29 = vector.load %arg7[%c0_18, %c0_19, %c0_20] : memref<1x4x1xf32, #tpu.memory_space<vmem>>, vector<1x4x1xf32>
    %30 = vector.shape_cast %29 : vector<1x4x1xf32> to vector<4x1xf32>
    %31 = vector.shape_cast %28 : vector<4x1xf32> to vector<1x4x1xf32>
    tpu.vector_store %arg7[%c0_18, %c0_19, %c0_20], %31 {strides = array<i32>} : memref<1x4x1xf32, #tpu.memory_space<vmem>>, vector<1x4x1xf32>,
    return
  }
  func.func @transform_0(%arg0: i32) -> (i32, i32, i32) {
    %c0_i32 = arith.constant 0 : i32
    %c0_i32_0 = arith.constant 0 : i32
    %c0_i32_1 = arith.constant 0 : i32
    return %arg0, %c0_i32, %c0_i32_0 : i32, i32, i32
  }
  func.func @transform_1(%arg0: i32) -> (i32, i32) {
    %c0_i32 = arith.constant 0 : i32
    %c0_i32_0 = arith.constant 0 : i32
    %c0_i32_1 = arith.constant 0 : i32
    return %c0_i32, %c0_i32_0 : i32, i32
  }
  func.func @transform_2(%arg0: i32) -> (i32, i32) {
    %c0_i32 = arith.constant 0 : i32
    %c0_i32_0 = arith.constant 0 : i32
    %c0_i32_1 = arith.constant 0 : i32
    return %c0_i32, %c0_i32_0 : i32, i32
  }
  func.func @transform_3(%arg0: i32) -> (i32, i32) {
    %c0_i32 = arith.constant 0 : i32
    %c0_i32_0 = arith.constant 0 : i32
    %c0_i32_1 = arith.constant 0 : i32
    return %c0_i32, %c0_i32_0 : i32, i32
  }
  func.func @transform_4(%arg0: i32) -> (i32, i32, i32) {
    %c0_i32 = arith.constant 0 : i32
    %c0_i32_0 = arith.constant 0 : i32
    %c0_i32_1 = arith.constant 0 : i32
    return %arg0, %c0_i32, %c0_i32_0 : i32, i32, i32
  }
  func.func @transform_5(%arg0: i32) -> (i32, i32, i32) {
    %c0_i32 = arith.constant 0 : i32
    %c0_i32_0 = arith.constant 0 : i32
    %c0_i32_1 = arith.constant 0 : i32
    return %arg0, %c0_i32, %c0_i32_0 : i32, i32, i32
  }
  func.func @transform_6(%arg0: i32) -> (i32, i32, i32) {
    %c0_i32 = arith.constant 0 : i32
    %c0_i32_0 = arith.constant 0 : i32
    %c0_i32_1 = arith.constant 0 : i32
    return %arg0, %c0_i32, %c0_i32_0 : i32, i32, i32
  }
}

</mosaic_0001>

<bundles_post_ra>
// kernel: basic_block_forward.5
= control target key start
LH: loop header
LB: loop body
LE: loop exit
PB: predicated region body
PF: predicated region fallthrough
CT: control target
= control target key end

     0   :  { %9 = vsyncpa [#allocation3], 0  ;;  %s553_s0 = inlined_call_operand.vmem [shape: f32[2,4,16], index: 0, kind: input, shape index: {}]   ;;  %s554_s1 = inlined_call_operand.vmem [shape: f32[2,4,16], index: 1, kind: input, shape index: {}]   ;;  %s555_s2 = inlined_call_operand.vmem [shape: f32[4,1], index: 2, kind: input, shape index: {}]   ;;  %s556_s3 = inlined_call_operand.vmem [shape: f32[4,1], index: 3, kind: input, shape index: {}]   ;;  %s557_s4 = inlined_call_operand.hbm [shape: f32[2,4,16], index: 4, kind: output, shape index: {}]  }
   0x1   :  { %11 = vsyncpa [#allocation3 + $0x1], 0  ;;  %s459_s15 = smov 0   ;;  %s461_s16 = smov 0  }
   0x2   :  { %s463_s17 = smov 0   ;;  %s465_s18 = smov 0  }
   0x3 LB: > { %s480_s19 = sadd.s32 4294967295, %s431_s18   ;;  %s317_s20 = sadd.s32 4294967294, %s431_s18   ;;  %s431_s18 = sphi %s465_s18, %s563_s18   ;;  %s427_s17 = sphi %s463_s17, %s562_s17   ;;  %s423_s16 = sphi %s461_s16, %s561_s16   ;;  %s419_s15 = sphi %s459_s15, %s560_s15  }
   0x4   : > { %s484_s21 = sadd.s32 1, %s431_s18   ;;  %s118_s22 = sadd.s32 1, %s427_s17 }
   0x5   : > { %s115_s23 = ssub.s32 %s431_s18, %s484_s21  ;;  %p128_p0 = scmp.ne.s32.totalorder %s427_s17, %s423_s16 }
   0x6   : > { %p116_p1 = scmp.eq.s32.totalorder %s115_s23, 0  ;;  %p129_p2 = scmp.eq.s32.totalorder %s480_s19, 1 }
   0x7   : > { %p134_p3 = scmp.ne.s32.totalorder %s423_s16, %s419_s15  ;;  %p135_p4 = scmp.eq.s32.totalorder %s317_s20, 1 }
   0x8   : > { %s495_s24 = scalar_select %p116_p1, %s427_s17, %s118_s22  }
   0x9   : > { %p497_p5 = por %p129_p2, %p128_p0  ;;  %p501_p6 = por %p135_p4, %p134_p3 }
   0xa   : > { %p320_p7 = scmp.ge.s32.totalorder %s431_s18, 1  ;;  %p173_p8 = scmp.lt.s32.totalorder %s431_s18, 3 }
   0xc   : > { %p174_p9 = pnand %p320_p7, %p173_p8 }
   0xd   : > { %p202_p10 = scmp.lt.s32.totalorder (!%p174_p9), %s480_s19, 1  ;;  %s199_s10 = sand.u32 (!%p174_p9), 1, %s423_s16  }
   0xe   : > { %177 = sbr.rel (%p174_p9) target bundleno = 153 (0x99), region = 36  ;;  %s321_s11 = sshll.u32 (!%p174_p9), %s199_s10, 2 }
   0xf   : > { %s325_s12 = sshll.u32 (!%p174_p9), %s480_s19, 2  ;;  %s201_s28 = scalar_lea.vmem (!%p174_p9), [#allocation2], %s321_s11 }
  0x10   : > { %s241_s27 = scalar_lea.hbm (!%p174_p9), %s557_s4, %s325_s12  ;;  %s243_s29 = sshll.u32 (!%p174_p9), %s201_s28, 4  ;;  %s244_s29 = int_to_ptr.vmem [resolvable:$true] %s243_s29 }
  0x11   : > { %s245_s30 = sshll.u32 (!%p174_p9), %s241_s27, 4  ;;  %s246_s30 = int_to_ptr.hbm [resolvable:$true] %s245_s30 }
  0x13   : > { %v211_v0 = vld [vmem:[%s555_s2] sm:$0xf]  ;;  %v433_v1 = vmov 0   ;;  %s203_s5 = scalar_select %p202_p10, %s480_s19, 1  ;;  %vm228_vm0 = vcmask 125952  }
  0x14   : > { %368 = vset.pattern.permute.xlu0 %v433_v1  ;;  %v218_v2 = vld [vmem:[%s556_s3] sm:$0xf]  ;;  %s231_s19 = scalar_lea.sflag [#allocation3], %s199_s10 }
  0x15   : > { %214 = vperm.xlu0 %368, %v211_v0   ;;  %s322_s6 = sshll.u32 %s203_s5, 2  ;;  %s383_s5 = sshra.s32 %s246_s30, 4  ;;  %s384_s5 = int_to_ptr.hbm [resolvable:$true] %s383_s5 }
  0x16   : > { %s205_s9 = scalar_lea.vmem %s553_s0, %s322_s6  ;;  %s209_s20 = scalar_lea.vmem %s554_s1, %s322_s6 }
  0x17   : > { %v210_v4 = vld [vmem:[%s205_s9] sm:$0xf]  ;;  %s385_s6 = scalar_lea.hbm %s384_s5, 4  ;;  %s389_s9 = scalar_lea.hbm %s557_s4, 8 }
  0x18   : > { %v225_v7 = vld [vmem:[%s209_s20] sm:$0xf]  ;;  %p386_p11 = scmp.ne.s32.totalorder %s384_s5, %s385_s6  ;;  %p390_p0 = scmp.lt.s32.totalorder %s384_s5, %s557_s4 }
  0x19   : > { %p391_p1 = scmp.lt.s32.totalorder %s389_s9, %s385_s6 }
  0x1a   : > { %p387_p12 = pnand %p386_p11, %p497_p5 }
  0x1b   : > { %p392_p2 = por %p391_p1, %p390_p0 }
  0x1c   : > { %p388_p13 = pneg %p387_p12 }
  0x1d   : > { %221 = vperm.xlu0 %368, %v218_v2  }
  0x1e   : > { %p393_p3 = pnand %p392_p2, %p388_p13 }
  0x87   : > { %v215_v3 = vpop.permute.xlu0 %214 }
  0x88   : > { %v217_v5 = vmul.f32 %v215_v3, %v210_v4 }
  0x8f   : > { %v222_v6 = vpop.permute.xlu0 %221 }
  0x90   : > { %v224_v8 = vadd.f32 %v222_v6, %v217_v5 }
  0x92   : > { %v226_v9 = vadd.f32 %v225_v7, %v224_v8 }
  0x94   : > { %v227_v10 = vmax.f32 %v226_v9, 0.0 }
  0x96   : > { %229 = vst.msk [vmem:[%s201_s28] sm:$0xf] %vm228_vm0, %v227_v10 }
  0x97   : > { %396 = shalt.err (!%p393_p3)
}
  0x98   : > { %328 = dma.vmem_to_hbm [thread:$0]  (%p497_p5), %s244_s29, 64, %s246_s30, %s231_s19  }
  0x99 PF: > { %p334_p4 = scmp.ge.s32.totalorder %s431_s18, 2  ;;  %s257_s10 = sand.u32 1, %s419_s15  }
  0x9a   : > { %s258_s13 = scalar_lea.sflag [#allocation3], %s257_s10 }
  0x9b   : > { %p331_p7 = pnand %p334_p4, %p501_p6 }
  0x9d   : > { %p332_p8 = pneg %p331_p7 }
  0x9f   : > { %414 = dma.done.wait (%p332_p8), %s258_s13, 64  }
  0xa0   : > { %416 = vsyncadd (%p332_p8), %s258_s13, 4294967232  ;;  %p14_p9 = scmp.ge.s32.totalorder %s484_s21, 4   ;;  %s560_s15 = smov %s423_s16 }
  0xa1   : > { %s561_s16 = smov %s427_s17  ;;  %s562_s17 = smov %s495_s24 }
  0xa2   : > { %s563_s18 = smov %s484_s21  ;;  %16 = sbr.rel (!%p14_p9) target bundleno = 3 (0x3), region = 74 }
  0xa7   :  { %264 = vsyncpa [#allocation3], 1 }
  0xa8   :  { %266 = vsyncpa [#allocation3 + $0x1], 1 }

// kernel: basic_block_forward.3
= control target key start
LH: loop header
LB: loop body
LE: loop exit
PB: predicated region body
PF: predicated region fallthrough
CT: control target
= control target key end

     0   :  { %s443_s15 = smov 0   ;;  %s475_s0 = inlined_call_operand.vmem [shape: f32[2,4,16], index: 0, kind: input, shape index: {}]   ;;  %s476_s1 = inlined_call_operand.vmem [shape: f32[4,12], index: 1, kind: input, shape index: {}]   ;;  %s477_s2 = inlined_call_operand.vmem [shape: f32[2,4,16], index: 2, kind: output, shape index: {0}]   ;;  %s478_s3 = inlined_call_operand.vmem [shape: f32[2,4,1], index: 3, kind: output, shape index: {1}]   ;;  %s479_s4 = inlined_call_operand.vmem [shape: f32[2,4,1], index: 4, kind: output, shape index: {2}]  }
   0x1 LB: > { %s385_s16 = sadd.s32 4294967295, %s414_s15   ;;  %p389_p0 = scmp.ge.s32.totalorder %s414_s15, 1  ;;  %s414_s15 = sphi %s443_s15, %s15_s15  }
   0x2   : > { %p166_p1 = scmp.lt.s32.totalorder %s414_s15, 3 }
   0x4   : > { %p167_p2 = pnand %p389_p0, %p166_p1 }
   0x5   : > { %p198_p3 = scmp.lt.s32.totalorder (!%p167_p2), %s385_s16, 1  ;;  %s416_s21 = smov (!%p167_p2), 127  }
   0x6   : > { %170 = sbr.rel (%p167_p2) target bundleno = 393 (0x189), region = 28  ;;  %s417_s22 = smov (!%p167_p2), 1  }
   0xb   : > { %s481_s16 = smov (!%p198_p3, %s385_s16), 1  ;;  %vm224_vm0 = vcmask 121856   ;;  %vm228_vm1 = vcmask 1043456   ;;  %vm219_vm2 = vcmask 7168   ;;  %v230_v6 = vld [vmem:[%s476_s1] sm:$0xf] }
   0xc   : > { %s451_s17 = sshll.u32 %s481_s16, 2  ;;  %vm231_vm3 = vcmask 97280   ;;  %vm258_vm4 = vcmask 125952   ;;  %vm263_vm5 = vcmask 3072  }
   0xd   : > { %s201_s20 = scalar_lea.vmem %s475_s0, %s451_s17  ;;  %s205_s27 = scalar_lea.vmem %s477_s2, %s451_s17 }
   0xe   : > { %v214_v0 = vld [vmem:[%s201_s20] sm:$0xf]  ;;  %s209_s30 = scalar_lea.vmem %s478_s3, %s451_s17  ;;  %s213_s7 = scalar_lea.vmem %s479_s4, %s451_s17 }
   0xf   : > { %221 = vrot.lane.b32.xlu0 %v214_v0, %s416_s21  ;;  %v226_v3 = vrot.slane %v214_v0, 4 }
  0x17   : > { %216 = vrot.lane.b32.xlu0 %v214_v0, %s417_s22 }
  0x81   : > { %v222_v1 = vpop.permute.xlu0 %221 }
  0x82   : > { %v225_v2 = vsel %vm224_vm0, %v222_v1, 0.0 }
  0x83   : > { %394 = vmatpush.msk.msra.mxu0 %vm228_vm1, %v225_v2 }
  0x89   : > { %v217_v4 = vpop.permute.xlu0 %216 }
  0x8a   : > { %v220_v5 = vsel %vm219_vm2, 0.0, %v217_v4 }
  0x8b   : > { %v229_v7 = vsel %vm228_vm1, %v220_v5, %v226_v3 }
  0x8c   : > { %253 = vmatpush.msra.mxu0 %v229_v7 }
  0x8d   : > { %395 = vmatmul.msk.f32.vlgmr.msra.gmra.mxu0 %vm231_vm3, %v230_v6 }
 0x10a   : > { %v255_v8 = vpop.f32.mrf.mxu0 }
 0x10b   : > { %259 = vst.msk [vmem:[%s205_s27] sm:$0xf] %vm258_vm4, %v255_v8  ;;  %v260_v9 = vsel %vm258_vm4, %v255_v8, 0.0  ;;  %v265_v10 = vmul.f32 %v255_v8, %v255_v8 }
 0x10c   : > { %261 = vadd.xlane.f32.xlu1 %v260_v9 }
 0x10d   : > { %v266_v11 = vsel %vm258_vm4, %v265_v10, 0.0 }
 0x114   : > { %267 = vadd.xlane.f32.xlu1 %v266_v11 }
 0x17f   : > { %v262_v12 = vpop.xlane.xlu1 %261 }
 0x180   : > { %264 = vst.msk [vmem:[%s209_s30] sm:$0xf] %vm263_vm5, %v262_v12 }
 0x187   : > { %v268_v13 = vpop.xlane.xlu1 %267 }
 0x188   : > { %269 = vst.msk [vmem:[%s213_s7] sm:$0xf] %vm263_vm5, %v268_v13 }
 0x189 PF: > { %s15_s15 = sadd.s32 1, %s414_s15  }
 0x18a   : > { %p12_p4 = scmp.ge.s32.totalorder %s15_s15, 4  }
 0x18c   :  { %14 = sbr.rel (!%p12_p4) target bundleno = 1 (0x1), region = 82 }

// kernel: basic_block_forward.4
= control target key start
LH: loop header
LB: loop body
LE: loop exit
PB: predicated region body
PF: predicated region fallthrough
CT: control target
= control target key end

     0   :  { %s525_s21 = smov 0   ;;  %s563_s0 = inlined_call_operand.vmem [shape: f32[2,4,16], index: 0, kind: input, shape index: {}]   ;;  %s564_s1 = inlined_call_operand.vmem [shape: f32[4,1], index: 1, kind: input, shape index: {}]   ;;  %s565_s2 = inlined_call_operand.vmem [shape: f32[4,1], index: 2, kind: input, shape index: {}]   ;;  %s566_s3 = inlined_call_operand.vmem [shape: f32[4,12], index: 3, kind: input, shape index: {}]   ;;  %s567_s4 = inlined_call_operand.vmem [shape: f32[2,4,16], index: 4, kind: output, shape index: {0}]   ;;  %s568_s5 = inlined_call_operand.vmem [shape: f32[2,4,1], index: 5, kind: output, shape index: {1}]   ;;  %s569_s6 = inlined_call_operand.vmem [shape: f32[2,4,1], index: 6, kind: output, shape index: {2}]  }
   0x1 LB: > { %s454_s22 = sadd.s32 4294967295, %s485_s21   ;;  %p458_p0 = scmp.ge.s32.totalorder %s485_s21, 1  ;;  %s485_s21 = sphi %s525_s21, %s17_s21  }
   0x2   : > { %p216_p1 = scmp.lt.s32.totalorder %s485_s21, 3 }
   0x4   : > { %p217_p2 = pnand %p458_p0, %p216_p1 }
   0x5   : > { %p252_p3 = scmp.lt.s32.totalorder (!%p217_p2), %s454_s22, 1  ;;  %s488_s7 = smov (!%p217_p2), 127  }
   0x6   : > { %220 = sbr.rel (%p217_p2) target bundleno = 518 (0x206), region = 36  ;;  %s489_s8 = smov (!%p217_p2), 1  }
   0xb   : > { %v269_v0 = vld [vmem:[%s564_s1] sm:$0xf]  ;;  %v487_v1 = vmov 0   ;;  %s571_s22 = smov (!%p252_p3, %s454_s22), 1  ;;  %vm293_vm0 = vcmask 121856   ;;  %vm297_vm1 = vcmask 1043456  }
   0xc   : > { %478 = vset.pattern.permute.xlu0 %v487_v1  ;;  %v276_v2 = vld [vmem:[%s565_s2] sm:$0xf]  ;;  %s539_s27 = sshll.u32 %s571_s22, 2  ;;  %vm288_vm2 = vcmask 7168   ;;  %vm300_vm3 = vcmask 97280   ;;  %vm327_vm4 = vcmask 125952  }
   0xd   : > { %272 = vperm.xlu0 %478, %v269_v0   ;;  %s255_s30 = scalar_lea.vmem %s563_s0, %s539_s27  ;;  %v299_v14 = vld [vmem:[%s566_s3] sm:$0xf]  ;;  %s259_s13 = scalar_lea.vmem %s567_s4, %s539_s27  ;;  %vm332_vm5 = vcmask 3072  }
   0xe   : > { %v268_v4 = vld [vmem:[%s255_s30] sm:$0xf]  ;;  %s263_s16 = scalar_lea.vmem %s568_s5, %s539_s27  ;;  %s267_s19 = scalar_lea.vmem %s569_s6, %s539_s27 }
  0x15   : > { %279 = vperm.xlu0 %478, %v276_v2  }
  0x7f   : > { %v273_v3 = vpop.permute.xlu0 %272 }
  0x80   : > { %v275_v5 = vmul.f32 %v273_v3, %v268_v4 }
  0x87   : > { %v280_v6 = vpop.permute.xlu0 %279 }
  0x88   : > { %v282_v7 = vadd.f32 %v280_v6, %v275_v5 }
  0x8a   : > { %v283_v8 = vmax.f32 %v282_v7, 0.0 }
  0x8c   : > { %290 = vrot.lane.b32.xlu1 %v283_v8, %s488_s7  ;;  %v295_v12 = vrot.slane %v283_v8, 4 }
  0x94   : > { %285 = vrot.lane.b32.xlu1 %v283_v8, %s489_s8 }
  0xfe   : > { %v291_v9 = vpop.permute.xlu1 %290 }
  0xff   : > { %v294_v10 = vsel %vm293_vm0, %v291_v9, 0.0 }
 0x100   : > { %463 = vmatpush.msk.msra.mxu0 %vm297_vm1, %v294_v10 }
 0x106   : > { %v286_v11 = vpop.permute.xlu1 %285 }
 0x107   : > { %v289_v13 = vsel %vm288_vm2, 0.0, %v286_v11 }
 0x108   : > { %v298_v15 = vsel %vm297_vm1, %v289_v13, %v295_v12 }
 0x109   : > { %322 = vmatpush.msra.mxu0 %v298_v15 }
 0x10a   : > { %464 = vmatmul.msk.f32.vlgmr.msra.gmra.mxu0 %vm300_vm3, %v299_v14 }
 0x187   : > { %v324_v16 = vpop.f32.mrf.mxu0 }
 0x188   : > { %328 = vst.msk [vmem:[%s259_s13] sm:$0xf] %vm327_vm4, %v324_v16  ;;  %v329_v17 = vsel %vm327_vm4, %v324_v16, 0.0  ;;  %v334_v18 = vmul.f32 %v324_v16, %v324_v16 }
 0x189   : > { %330 = vadd.xlane.f32.xlu2 %v329_v17 }
 0x18a   : > { %v335_v19 = vsel %vm327_vm4, %v334_v18, 0.0 }
 0x191   : > { %336 = vadd.xlane.f32.xlu2 %v335_v19 }
 0x1fc   : > { %v331_v20 = vpop.xlane.xlu2 %330 }
 0x1fd   : > { %333 = vst.msk [vmem:[%s263_s16] sm:$0xf] %vm332_vm5, %v331_v20 }
 0x204   : > { %v337_v21 = vpop.xlane.xlu2 %336 }
 0x205   : > { %338 = vst.msk [vmem:[%s267_s19] sm:$0xf] %vm332_vm5, %v337_v21 }
 0x206 PF: > { %s17_s21 = sadd.s32 1, %s485_s21  }
 0x207   : > { %p14_p4 = scmp.ge.s32.totalorder %s17_s21, 4  }
 0x209   :  { %16 = sbr.rel (!%p14_p4) target bundleno = 1 (0x1), region = 90 }

</bundles_post_ra>
